<compile_context>
chip_gen: v5e
topology: v5e:2x2
jax: 0.10.0
libtpu: 0.0.40
codegen_flags: <defaults>
</compile_context>

<pallas_src>
import jax
import jax.numpy as jnp
from jax import lax
from jax.experimental import pallas as pl
from jax.experimental.pallas import tpu as pltpu

_HIDDEN = 64


def _round_up(n, m):
    return ((n + m - 1) // m) * m


def _vmem_capacity_bytes():
    try:
        return int(pltpu.get_tpu_info().vmem_capacity_bytes)
    except Exception:
        return 64 * 1024 * 1024  # conservative default (v7x per-TC VMEM)


def _choose_tile(B, obs_dim, dsize, vmem_cap):
    """Pick the batch tile (rows per grid step) using lane-padded VMEM math."""
    if B <= 128:
        return _round_up(max(B, 8), 8)

    # Scratch budget: ~40 MiB on 64 MiB (v7x), ~80 MiB on 128 MiB (v5e/v6e).
    budget = max(16 << 20, min(int(0.625 * vmem_cap), vmem_cap - (24 << 20)))

    lane_pad = _round_up(obs_dim, 128)
    per_row = (2 * lane_pad * dsize    # x double-buffer (lane-padded!)
               + _HIDDEN * 4           # h intermediate (f32)
               + 3 * 8 * 4)            # out double-buffer + v (8-sublane padded)
    tb = (budget // per_row // 128) * 128
    tb = max(128, min(tb, 32768))              # absolute sanity cap
    tb = min(tb, _round_up(B, 128))            # never exceed the batch

    # Keep >= 4 grid steps when the batch is big enough so the "parallel" axis
    # can feed both TensorCores on v7x (no-op cost on 1-TC chips).
    if B >= 4 * 1024:
        tb = min(tb, _round_up(-(-B // 4), 128))
    return tb


def _value_net_kernel(x_ref, w1t_ref, b1_ref, w2t_ref, b2_ref, o_ref):
    """One batch tile, computed 'transposed' (batch on the lane axis).

    x_ref:   (tb, obs_dim)      input dtype (f32 or bf16)
    w1t_ref: (hidden, obs_dim)  same dtype as x
    b1_ref:  (hidden, 1)        f32
    w2t_ref: (1, hidden)        f32
    b2_ref:  (1,)               f32, SMEM scalar
    o_ref:   (1, tb)            f32, lane-dense output block
    """
    # hT[h, t] = sum_k w1[k, h] * x[t, k]  -> (hidden, tb), f32 MXU accumulation
    h = lax.dot_general(
        w1t_ref[...], x_ref[...],
        dimension_numbers=(((1,), (1,)), ((), ())),
        preferred_element_type=jnp.float32,
    )
    h = jnp.maximum(h + b1_ref[...], 0.0)          # bias column broadcasts over lanes
    # Layer 2 as (1, hidden) @ (hidden, tb) -> (1, tb): MXU-friendly, N = tb
    v = jnp.dot(w2t_ref[...], h, preferred_element_type=jnp.float32)
    v = v + b2_ref[0]                              # scalar bias from SMEM
    o_ref[...] = v.astype(o_ref.dtype)             # lane-dense store


def value_network_forward(x, w1, b1, w2, b2, *, tb=None):
    """Fused ValueNetwork forward. x: (B, obs_dim) -> (B,) float32.

    x is read in its native dtype (f32 or bf16) -- no wrapper-side cast pass.
    """
    B, obs_dim = x.shape
    hidden = w1.shape[1]
    compute_dtype = x.dtype
    dsize = jnp.dtype(compute_dtype).itemsize
    vmem_cap = _vmem_capacity_bytes()

    if tb is None:
        tb = _choose_tile(B, obs_dim, dsize, vmem_cap)
    else:
        tb = _round_up(max(tb, 8), 8)
    num_tiles = -(-B // tb)           # cdiv; boundary block over-reads (no jnp.pad)
    B_work = num_tiles * tb

    # --- operand layouts (weights are tiny; reshaping/casting them is free plumbing)
    w1t = jnp.transpose(w1).astype(compute_dtype)        # (hidden, obs_dim)
    b1_col = b1.reshape(hidden, 1).astype(jnp.float32)   # (hidden, 1)
    w2t = w2.reshape(hidden, 1).T.astype(jnp.float32)    # (1, hidden)
    b2_s = b2.reshape(1).astype(jnp.float32)             # (1,) -> SMEM scalar

    # --- lane-padding-correct VMEM accounting + explicit limit
    lane_pad = _round_up(obs_dim, 128)
    tb_lane = _round_up(tb, 128)
    vmem_need = (2 * tb * lane_pad * dsize                         # x double-buffer
                 + 2 * _round_up(hidden, 8) * lane_pad * dsize     # w1t
                 + 2 * _round_up(hidden, 8) * 128 * 4              # b1 column
                 + 2 * 8 * _round_up(hidden, 128) * 4              # w2t row
                 + 2 * 8 * tb_lane * 4                             # output double-buffer
                 + _round_up(hidden, 8) * tb_lane * 4              # h intermediate
                 + 8 * tb_lane * 4)                                # v intermediate
    vmem_limit = int(min(max(int(1.5 * vmem_need), 8 << 20), int(0.9 * vmem_cap)))

    flops = 2 * B_work * obs_dim * hidden + 2 * B_work * hidden
    bytes_accessed = (B_work * obs_dim * dsize + obs_dim * hidden * dsize
                      + hidden * 4 + hidden * 4 + 4 + B_work * 4)

    out = pl.pallas_call(
        _value_net_kernel,
        out_shape=jax.ShapeDtypeStruct((num_tiles, tb), jnp.float32),
        grid_spec=pltpu.PrefetchScalarGridSpec(
            num_scalar_prefetch=0,
            grid=(num_tiles,),
            in_specs=[
                pl.BlockSpec((tb, obs_dim), lambda i: (i, 0)),       # x tile (streamed)
                pl.BlockSpec((hidden, obs_dim), lambda i: (0, 0)),   # w1^T (resident)
                pl.BlockSpec((hidden, 1), lambda i: (0, 0)),         # b1 column
                pl.BlockSpec((1, hidden), lambda i: (0, 0)),         # w2^T row
                pl.BlockSpec(memory_space=pltpu.MemorySpace.SMEM),   # b2 scalar
            ],
            out_specs=pl.BlockSpec((1, tb), lambda i: (i, 0)),       # lane-dense out
        ),
        compiler_params=pltpu.CompilerParams(
            dimension_semantics=("parallel",),      # shards tiles across v7x's 2 TCs
            vmem_limit_bytes=vmem_limit,
        ),
        cost_estimate=pl.CostEstimate(
            flops=flops, transcendentals=0, bytes_accessed=bytes_accessed),
    )(x, w1t, b1_col, w2t, b2_s)

    # (num_tiles, tb) row-major == batch order; garbage tail lanes from the
    # over-read boundary block are sliced off here. PyTorch .squeeze(-1) -> (B,)
    return out.reshape(B_work)[:B]


def init_params(key, obs_dim, hidden=_HIDDEN):
    """Deterministic init mimicking PyTorch Linear defaults (uniform +/- 1/sqrt(fan_in))."""
    k1, k2, k3, k4 = jax.random.split(key, 4)
    lim1 = 1.0 / jnp.sqrt(jnp.float32(obs_dim))
    lim2 = 1.0 / jnp.sqrt(jnp.float32(hidden))
    w1 = jax.random.uniform(k1, (obs_dim, hidden), jnp.float32, -lim1, lim1)
    b1 = jax.random.uniform(k2, (hidden,), jnp.float32, -lim1, lim1)
    w2 = jax.random.uniform(k3, (hidden, 1), jnp.float32, -lim2, lim2)
    b2 = jax.random.uniform(k4, (1,), jnp.float32, -lim2, lim2)
    return w1, b1, w2, b2


if __name__ == "__main__":
    key = jax.random.PRNGKey(0)
    kx, kp = jax.random.split(key)

    obs_dim, hidden = 16, _HIDDEN
    w1, b1, w2, b2 = init_params(kp, obs_dim, hidden=hidden)

    def ref_fn(xx):
        xf = xx.astype(jnp.float32)
        return (jnp.maximum(xf @ w1 + b1, 0.0) @ w2 + b2)[:, 0]

    # 1) f32, tiny batch (B <= 128 branch, full-dim blocks, masked narrow store).
    B = 8
    x = jax.random.normal(kx, (B, obs_dim), jnp.float32)
    out = jax.block_until_ready(value_network_forward(x, w1, b1, w2, b2))
    assert out.shape == (B,)
    assert jnp.allclose(out, ref_fn(x), atol=1e-5, rtol=1e-5)

    # 2) f32, ragged batch (exercises the over-reading boundary block, no jnp.pad).
    B2 = 1000
    x2 = jax.random.normal(jax.random.PRNGKey(1), (B2, obs_dim), jnp.float32)
    out2 = jax.block_until_ready(value_network_forward(x2, w1, b1, w2, b2))
    assert out2.shape == (B2,)
    assert jnp.allclose(out2, ref_fn(x2), atol=1e-5, rtol=1e-5)

    # 3) x already bf16 upstream (kernel reads it natively -- no wrapper cast pass).
    B3 = 384
    x3 = jax.random.normal(jax.random.PRNGKey(2), (B3, obs_dim), jnp.float32)
    x3 = x3.astype(jnp.bfloat16)
    out3 = jax.block_until_ready(value_network_forward(x3, w1, b1, w2, b2))
    assert out3.shape == (B3,)
    assert jnp.allclose(out3, ref_fn(x3), atol=5e-2, rtol=5e-2)

    print("KERNEL_OK")
</pallas_src>

<mosaic_0001>
module attributes {stable_mosaic.version = 11 : i64} {
  func.func @_value_net_kernel(%arg0: i32, %arg1: memref<8x16xf32, #tpu.memory_space<vmem>>, %arg2: memref<64x16xf32, #tpu.memory_space<vmem>>, %arg3: memref<64x1xf32, #tpu.memory_space<vmem>>, %arg4: memref<1x64xf32, #tpu.memory_space<vmem>>, %arg5: memref<1xf32, #tpu.memory_space<smem>>, %arg6: memref<1x8xf32, #tpu.memory_space<vmem>>) attributes {dimension_semantics = [#tpu.dimension_semantics<parallel>], iteration_bounds = array<i64: 1>, scalar_prefetch = 0 : i64, scratch_operands = 0 : i64, tpu.core_type = #tpu.core_type<tc>, window_params = [{transform_indices = @transform_0, window_bounds = array<i64: 8, 16>}, {pipeline_mode = #tpu.pipeline_mode<synchronous>, transform_indices = @transform_1, window_bounds = array<i64: 64, 16>}, {pipeline_mode = #tpu.pipeline_mode<synchronous>, transform_indices = @transform_2, window_bounds = array<i64: 64, 1>}, {pipeline_mode = #tpu.pipeline_mode<synchronous>, transform_indices = @transform_3, window_bounds = array<i64: 1, 64>}, {transform_indices = @transform_4, window_bounds = array<i64: 1>}, {transform_indices = @transform_5, window_bounds = array<i64: 1, 8>}]} {
    %c0 = arith.constant 0 : index
    %c0_0 = arith.constant 0 : index
    %0 = vector.load %arg2[%c0, %c0_0] : memref<64x16xf32, #tpu.memory_space<vmem>>, vector<64x16xf32>
    %c0_1 = arith.constant 0 : index
    %c0_2 = arith.constant 0 : index
    %1 = vector.load %arg1[%c0_1, %c0_2] : memref<8x16xf32, #tpu.memory_space<vmem>>, vector<8x16xf32>
    %cst = arith.constant dense<0.000000e+00> : vector<64x8xf32>
    %2 = tpu.matmul %0, %1, %cst {dimension_numbers = #tpu.dot_dimension_numbers<[1], [1], [0], [0], [0, 0, 1, 0], [], []>} : vector<64x16xf32>, vector<8x16xf32>, vector<64x8xf32> -> vector<64x8xf32>
    %c0_3 = arith.constant 0 : index
    %c0_4 = arith.constant 0 : index
    %3 = vector.load %arg3[%c0_3, %c0_4] : memref<64x1xf32, #tpu.memory_space<vmem>>, vector<64x1xf32>
    %4 = vector.broadcast %3 : vector<64x1xf32> to vector<64x8xf32>
    %5 = arith.addf %2, %4 : vector<64x8xf32>
    %cst_5 = arith.constant 0.000000e+00 : f32
    %6 = vector.broadcast %cst_5 : f32 to vector<64x8xf32>
    %7 = arith.maximumf %5, %6 : vector<64x8xf32>
    %c0_6 = arith.constant 0 : index
    %c0_7 = arith.constant 0 : index
    %8 = vector.load %arg4[%c0_6, %c0_7] : memref<1x64xf32, #tpu.memory_space<vmem>>, vector<1x64xf32>
    %cst_8 = arith.constant dense<0.000000e+00> : vector<1x8xf32>
    %9 = tpu.matmul %8, %7, %cst_8 {dimension_numbers = #tpu.dot_dimension_numbers<[1], [0], [0], [1], [0, 0, 1, 1], [], []>} : vector<1x64xf32>, vector<64x8xf32>, vector<1x8xf32> -> vector<1x8xf32>
    %c0_9 = arith.constant 0 : index
    %10 = memref.load %arg5[%c0_9] : memref<1xf32, #tpu.memory_space<smem>>
    %11 = vector.broadcast %10 : f32 to vector<1x8xf32>
    %12 = arith.addf %9, %11 : vector<1x8xf32>
    %c0_10 = arith.constant 0 : index
    %c0_11 = arith.constant 0 : index
    %13 = vector.load %arg6[%c0_10, %c0_11] : memref<1x8xf32, #tpu.memory_space<vmem>>, vector<1x8xf32>
    tpu.vector_store %arg6[%c0_10, %c0_11], %12 {strides = array<i32>} : memref<1x8xf32, #tpu.memory_space<vmem>>, vector<1x8xf32>,
    return
  }
  func.func @transform_0(%arg0: i32) -> (i32, i32) {
    %c0_i32 = arith.constant 0 : i32
    %c0_i32_0 = arith.constant 0 : i32
    return %arg0, %c0_i32 : i32, i32
  }
  func.func @transform_1(%arg0: i32) -> (i32, i32) {
    %c0_i32 = arith.constant 0 : i32
    %c0_i32_0 = arith.constant 0 : i32
    %c0_i32_1 = arith.constant 0 : i32
    return %c0_i32, %c0_i32_0 : i32, i32
  }
  func.func @transform_2(%arg0: i32) -> (i32, i32) {
    %c0_i32 = arith.constant 0 : i32
    %c0_i32_0 = arith.constant 0 : i32
    %c0_i32_1 = arith.constant 0 : i32
    return %c0_i32, %c0_i32_0 : i32, i32
  }
  func.func @transform_3(%arg0: i32) -> (i32, i32) {
    %c0_i32 = arith.constant 0 : i32
    %c0_i32_0 = arith.constant 0 : i32
    %c0_i32_1 = arith.constant 0 : i32
    return %c0_i32, %c0_i32_0 : i32, i32
  }
  func.func @transform_4(%arg0: i32) -> i32 {
    %c0_i32 = arith.constant 0 : i32
    %c0_i32_0 = arith.constant 0 : i32
    return %c0_i32 : i32
  }
  func.func @transform_5(%arg0: i32) -> (i32, i32) {
    %c0_i32 = arith.constant 0 : i32
    %c0_i32_0 = arith.constant 0 : i32
    return %arg0, %c0_i32 : i32, i32
  }
}

</mosaic_0001>

<bundles_post_ra>
// kernel: tpu_custom_call.1
= control target key start
LH: loop header
LB: loop body
LE: loop exit
PB: predicated region body
PF: predicated region fallthrough
CT: control target
= control target key end

     0   :  { %vm79_vm0 = vcmask 130048   ;;  %v244_v5 = vmov 0   ;;  %s347_s0 = inlined_call_operand.vmem [shape: f32[8,16], index: 0, kind: input, shape index: {}]   ;;  %s348_s1 = inlined_call_operand.vmem [shape: f32[64,16], index: 1, kind: input, shape index: {}]   ;;  %s349_s2 = inlined_call_operand.vmem [shape: f32[64,1], index: 2, kind: input, shape index: {}]   ;;  %s350_s3 = inlined_call_operand.vmem [shape: f32[1,64], index: 3, kind: input, shape index: {}]   ;;  %s351_s4 = inlined_call_operand.<no memory space> [shape: f32[1], index: 4, kind: input, shape index: {}]   ;;  %s352_s5 = inlined_call_operand.hbm [shape: f32[1,8], index: 5, kind: output, shape index: {}]  }
   0x1   :  { %v30_v0 = vld [vmem:[%s347_s0] sm:$0xff]  ;;  %v25_v1 = vld [vmem:[%s348_s1 + $0x18] sm:$0xff]  ;;  %v28_v2 = vld [vmem:[%s348_s1 + $0x30] sm:$0xff]  ;;  %216 = vset.pattern.permute.xlu1 %v244_v5  ;;  %215 = vset.pattern.permute.xlu0 %v244_v5 }
   0x2   :  { %211 = vmatpush.xpose.msk.msra.mxu2 %vm79_vm0, %v30_v0  ;;  %212 = vmatpush.xpose.msk.msra.mxu3 %vm79_vm0, %v30_v0  ;;  %v36_v3 = vld [vmem:[%s349_s2 + $0x28] sm:$0xff]  ;;  %v22_v4 = vld [vmem:[%s348_s1] sm:$0xff]  ;;  %v38_v6 = vld [vmem:[%s349_s2 + $0x38] sm:$0xff] }
   0x3   :  { %201 = vmatpush.xpose.msk.msra.mxu0 %vm79_vm0, %v30_v0  ;;  %66 = vperm.xlu1 %216, %v36_v3   ;;  %v34_v7 = vld [vmem:[%s349_s2 + $0x18] sm:$0xff] }
   0x4   :  { %76 = vperm.xlu0 %215, %v38_v6  }
   0x5   :  { %205 = vmatmul.msk.f32.vlgmr.msra.gmra.mxu2 %vm79_vm0, %v25_v1  ;;  %208 = vmatmul.msk.f32.vlgmr.msra.gmra.mxu3 %vm79_vm0, %v28_v2 }
   0x6   :  { %202 = vmatmul.msk.f32.vlgmr.msra.gmra.mxu0 %vm79_vm0, %v22_v4 }
   0x7   :  { %11 = vsyncpa [#allocation4], 0  ;;  %217 = vset.pattern.permute.xlu2 %v244_v5  ;;  %v35_v8 = vld [vmem:[%s349_s2 + $0x20] sm:$0xff]  ;;  %v29_v10 = vld [vmem:[%s348_s1 + $0x38] sm:$0xff]  ;;  %vm159_vm1 = vcmask 523264   ;;  %v158_v51 = vstv %s351_s4  ;;  %s245_s27 = smov [#allocation3]  }
   0x8   :  { %56 = vperm.xlu2 %217, %v34_v7   ;;  %v26_v9 = vld [vmem:[%s348_s1 + $0x20] sm:$0xff]  ;;  %v23_v11 = vld [vmem:[%s348_s1 + $0x8] sm:$0xff]  ;;  %v37_v12 = vld [vmem:[%s349_s2 + $0x30] sm:$0xff]  ;;  %s190_s28 = sshll.u32 %s245_s27, 4  ;;  %s192_s6 = sshll.u32 %s352_s5, 4  ;;  %vm183_vm2 = vcmask 57344   ;;  %s191_s28 = int_to_ptr.vmem [resolvable:$true] %s190_s28  ;;  %s193_s6 = int_to_ptr.hbm [resolvable:$true] %s192_s6 }
   0x9   :  { %v33_v13 = vld [vmem:[%s349_s2 + $0x10] sm:$0xff]  ;;  %v31_v14 = vld [vmem:[%s349_s2] sm:$0xff]  ;;  %v27_v15 = vld [vmem:[%s348_s1 + $0x28] sm:$0xff] }
   0xa   :  { %v24_v16 = vld [vmem:[%s348_s1 + $0x10] sm:$0xff]  ;;  %v32_v17 = vld [vmem:[%s349_s2 + $0x8] sm:$0xff]  ;;  %v156_v50 = vld [vmem:[%s350_s3] sm:$0x1] }
   0xb   :  { %61 = vperm.xlu1 %216, %v35_v8  }
   0xc   :  { %71 = vperm.xlu0 %215, %v37_v12  }
   0xd   :  { %206 = vmatmul.msk.f32.gmra.mxu2 %vm79_vm0, %v26_v9  ;;  %209 = vmatmul.msk.f32.gmra.mxu3 %vm79_vm0, %v29_v10 }
   0xe   :  { %203 = vmatmul.msk.f32.gmra.mxu0 %vm79_vm0, %v23_v11 }
  0x10   :  { %51 = vperm.xlu2 %217, %v33_v13  }
  0x13   :  { %41 = vperm.xlu1 %216, %v31_v14  }
  0x14   :  { %46 = vperm.xlu0 %215, %v32_v17  }
  0x15   :  { %207 = vmatmul.msk.f32.gmra.mxu2 %vm79_vm0, %v27_v15 }
  0x16   :  { %204 = vmatmul.msk.f32.gmra.mxu0 %vm79_vm0, %v24_v16 }
  0x62   :  { %v57_v29 = vpop.permute.xlu2 %56 }
  0x6a   :  { %v52_v36 = vpop.permute.xlu2 %51 }
  0x75   :  { %v67_v22 = vpop.permute.xlu1 %66 }
  0x76   :  { %v77_v18 = vpop.permute.xlu0 %76 }
  0x7d   :  { %v62_v31 = vpop.permute.xlu1 %61 }
  0x7e   :  { %v72_v23 = vpop.permute.xlu0 %71 }
  0x83   :  { %v124_v19 = vpop.f32.mrf.mxu0 }
  0x85   :  { %v42_v43 = vpop.permute.xlu1 %41 }
  0x86   :  { %v47_v40 = vpop.permute.xlu0 %46  ;;  %v125_v46 = vadd.f32 %v124_v19, %v42_v43 }
  0x88   :  { %v133_v20 = vpop.f32.mrf.mxu2  ;;  %v142_v21 = vpop.f32.mrf.mxu3  ;;  %v148_v49 = vmax.f32 %v125_v46, 0.0 }
  0x89   :  { %v143_v27 = vadd.f32 %v142_v21, %v72_v23  ;;  %v134_v38 = vadd.f32 %v133_v20, %v57_v29 }
  0x8b   :  { %v127_v24 = vpop.f32.mrf.mxu0  ;;  %v154_v32 = vmax.f32 %v143_v27, 0.0  ;;  %v151_v44 = vmax.f32 %v134_v38, 0.0 }
  0x8c   :  { %v128_v45 = vadd.f32 %v127_v24, %v47_v40 }
  0x8e   :  { %v149_v48 = vmax.f32 %v128_v45, 0.0 }
  0x90   :  { %v136_v25 = vpop.f32.mrf.mxu2  ;;  %v145_v26 = vpop.f32.mrf.mxu3 }
  0x91   :  { %v146_v28 = vadd.f32 %v145_v26, %v77_v18  ;;  %v137_v34 = vadd.f32 %v136_v25, %v62_v31 }
  0x93   :  { %v155_v30 = vmax.f32 %v146_v28, 0.0  ;;  %v130_v37 = vpop.f32.mrf.mxu0  ;;  %v152_v41 = vmax.f32 %v137_v34, 0.0 }
  0x94   :  { %v131_v42 = vadd.f32 %v130_v37, %v52_v36 }
  0x95   :  { %171 = vmatpush.msra.mxu1 %v155_v30 }
  0x96   :  { %v150_v47 = vmax.f32 %v131_v42, 0.0 }
  0x97   :  { %172 = vmatpush.msra.mxu1 %v154_v32 }
  0x98   :  { %v139_v33 = vpop.f32.mrf.mxu2 }
  0x99   :  { %v140_v35 = vadd.f32 %v139_v33, %v67_v22 }
  0x9b   :  { %v153_v39 = vmax.f32 %v140_v35, 0.0 }
  0x9d   :  { %173 = vmatpush.msra.mxu1 %v153_v39 }
  0x9f   :  { %174 = vmatpush.msra.mxu1 %v152_v41 }
  0xa1   :  { %175 = vmatpush.msra.mxu1 %v151_v44 }
  0xa3   :  { %176 = vmatpush.msra.mxu1 %v150_v47 }
  0xa5   :  { %177 = vmatpush.msra.mxu1 %v149_v48 }
  0xa7   :  { %178 = vmatpush.msra.mxu1 %v148_v49 }
  0xa8   :  { %210 = vmatmul.msk.f32.vlgmr.msra.gmra.mxu1 %vm159_vm1, %v156_v50 }
 0x125   :  { %v180_v52 = vpop.f32.mrf.mxu1 }
 0x126   :  { %v181_v53 = vadd.f32 %v180_v52, %v158_v51 }
 0x128   :  { %184 = vst.msk [vmem:[#allocation3] sm:$0x1] %vm183_vm2, %v181_v53 }
 0x129   :  { %195 = dma.vmem_to_hbm [thread:$0]  %s191_s28, 16, %s193_s6, [#allocation4]  }
 0x12a   :  { %242 = dma.done.wait [#allocation4], 16  }
 0x12b   :  { %243 = vsyncadd [#allocation4], 4294967280 }
 0x12c   :  { %200 = vsyncpa [#allocation4], 1 }

</bundles_post_ra>
